<compile_context>
chip_gen: v5e
topology: v5e:2x2
jax: 0.10.0
libtpu: 0.0.40
codegen_flags: <defaults>
</compile_context>

<pallas_src>
import functools

import jax
import jax.numpy as jnp
from jax.experimental import pallas as pl
from jax.experimental.pallas import tpu as pltpu

_TARGET_BLOCK_BYTES = 8 << 20   # per image block (in); 4 bufs stay < 48 MiB
_VMEM_LIMIT_CAP = 48 << 20      # fits v7x 64 MiB/TC; fine on v5e/v6e (128 MiB)
_MIN_GRID_STEPS = 8             # pipelining overlap + megacore sharding


def _cdiv(a: int, b: int) -> int:
    return -(-a // b)


def _round_up(a: int, b: int) -> int:
    return _cdiv(a, b) * b


def _sublane_multiple(itemsize: int) -> int:
    # f32 -> 8, bf16/f16 -> 16, int8/u8/fp8 -> 32 sublanes per native tile.
    return {4: 8, 2: 16, 1: 32}.get(itemsize, 8)


def _choose_blocks(rows: int, cols: int, itemsize: int,
                   target_bytes: int = _TARGET_BLOCK_BYTES,
                   min_grid: int = _MIN_GRID_STEPS):
    """Pick (block_rows, block_cols): lane-dense, budget-bounded, >= min_grid steps."""
    sub = _sublane_multiple(itemsize)
    row_unit = min(sub, rows) if rows > 0 else 1
    col_unit = min(128, cols) if cols > 0 else 1
    row_units = _cdiv(rows, row_unit)
    col_units = _cdiv(cols, col_unit)

    # Largest block fitting the byte budget: maximize cols (lane-dense stores)
    # first, then rows.
    bc_units = min(col_units,
                   max(1, target_bytes // (row_unit * col_unit * itemsize)))
    br_units = min(row_units,
                   max(1, target_bytes // (bc_units * col_unit * row_unit * itemsize)))

    def blocks(bru, bcu):
        # multiple-of-(8,128) blocks, or exactly the full dim (both legal).
        br = rows if bru >= row_units else bru * row_unit
        bc = cols if bcu >= col_units else bcu * col_unit
        return br, bc

    def grid_len(bru, bcu):
        br, bc = blocks(bru, bcu)
        return _cdiv(rows, br) * _cdiv(cols, bc)

    # Enforce enough grid steps for DMA/compute overlap and (on v7x) so both
    # TensorCores get work along the "parallel" axes. Shrink the longer axis.
    while grid_len(br_units, bc_units) < min_grid and (br_units > 1 or bc_units > 1):
        if bc_units >= br_units and bc_units > 1:
            bc_units = _cdiv(bc_units, 2)
        elif br_units > 1:
            br_units = _cdiv(br_units, 2)
        else:
            break

    return blocks(br_units, bc_units)


def _normalize_kernel(mean_ref, inv_std_ref, x_ref, o_ref):
    # mean/inv_std blocks broadcast against the image block:
    #   (block_rows, 1) for the per-row-param layout, or
    #   (1, block_cols) for the lane-dense small-frame layout.
    x = x_ref[...].astype(jnp.float32)
    o_ref[...] = ((x - mean_ref[...]) * inv_std_ref[...]).astype(o_ref.dtype)


def _pallas_normalize_bchw(img_bchw, mean, inv_std, *, inplace):
    """Per-channel normalize of a BCHW image batch via a Pallas kernel."""
    B, C, H, W = img_bchw.shape
    in_dtype = img_bchw.dtype
    # Integer images: Normalize is float-valued; emit float32 (no aliasing).
    out_dtype = in_dtype if jnp.issubdtype(in_dtype, jnp.floating) else jnp.float32
    itemsize = jnp.dtype(in_dtype).itemsize
    out_itemsize = jnp.dtype(out_dtype).itemsize

    mean = mean.astype(jnp.float32)
    inv_std = inv_std.astype(jnp.float32)

    if H * W >= 128:
        # Natural layout: rows = B*C (row -> channel = row % C), cols = H*W.
        rows, cols = B * C, H * W
        mean_2d = jnp.tile(mean, B).reshape(rows, 1)
        inv_2d = jnp.tile(inv_std, B).reshape(rows, 1)
        params_on_rows = True
    else:
        # Thumbnail frames: keep the output lane-dense by folding C into cols.
        rows, cols = B, C * H * W
        mean_2d = jnp.repeat(mean, H * W).reshape(1, cols)
        inv_2d = jnp.repeat(inv_std, H * W).reshape(1, cols)
        params_on_rows = False

    x2 = img_bchw.reshape(rows, cols)

    block_rows, block_cols = _choose_blocks(rows, cols, itemsize)
    grid = (_cdiv(rows, block_rows), _cdiv(cols, block_cols))

    if params_on_rows:
        param_block = (block_rows, 1)
        param_map = lambda i, j: (i, 0)   # DMA fires only when the row block changes
        param_vmem = _round_up(block_rows, 8) * 128 * 4      # (8,128)-tile padded
    else:
        param_block = (1, block_cols)
        param_map = lambda i, j: (0, j)
        param_vmem = 8 * _round_up(block_cols, 128) * 4

    # Explicit VMEM budget: double-buffered in + out blocks, double-buffered
    # params, 25% slack. Capped so it also fits v7x's 64 MiB per-TC VMEM and
    # explicitly raised above v5e's 16 MiB scoped default.
    img_block_bytes = block_rows * block_cols * itemsize
    out_block_bytes = block_rows * block_cols * out_itemsize
    vmem_needed = 2 * (img_block_bytes + out_block_bytes) + 4 * param_vmem
    vmem_limit = int(min(_VMEM_LIMIT_CAP,
                         max(vmem_needed * 5 // 4 + (1 << 20), 32 << 20)))

    cost = pl.CostEstimate(
        flops=2 * rows * cols,
        transcendentals=0,
        bytes_accessed=rows * cols * (itemsize + out_itemsize) + 2 * mean_2d.size * 4,
    )

    # inplace=True at the wrapper level -> reuse the input HBM buffer
    # (realized together with jit buffer donation in the wrapper below).
    alias = {2: 0} if (inplace and out_dtype == in_dtype) else {}

    out2 = pl.pallas_call(
        _normalize_kernel,
        out_shape=jax.ShapeDtypeStruct((rows, cols), out_dtype),
        grid=grid,
        in_specs=[
            pl.BlockSpec(param_block, param_map),
            pl.BlockSpec(param_block, param_map),
            pl.BlockSpec((block_rows, block_cols), lambda i, j: (i, j)),
        ],
        out_specs=pl.BlockSpec((block_rows, block_cols), lambda i, j: (i, j)),
        compiler_params=pltpu.CompilerParams(
            dimension_semantics=("parallel", "parallel"),
            vmem_limit_bytes=vmem_limit,
        ),
        cost_estimate=cost,
        input_output_aliases=alias,
    )(mean_2d, inv_2d, x2)

    return out2.reshape(B, C, H, W)


def _forward_impl(img, mean, inv_std, inplace):
    """JAX/Pallas equivalent of ImageWrapper.forward wrapping a Normalize."""
    # TODO(synk): Wrapper iterates arbitrary nn.Module transforms; only the
    # canonical per-channel Normalize transform is lowered to Pallas here.
    if img.ndim == 3:
        out = _pallas_normalize_bchw(img[None], mean, inv_std, inplace=inplace)
        return out[0]
    if img.ndim == 4:
        return _pallas_normalize_bchw(img, mean, inv_std, inplace=inplace)
    raise ValueError("Expected a 3-D or 4-D image tensor.")


# inplace=True -> donate the image buffer so input_output_aliases is genuinely
# in-place; inplace=False matches `tensor.clone()` (fresh output buffer).
_forward_copy = jax.jit(functools.partial(_forward_impl, inplace=False))
_forward_inplace = jax.jit(functools.partial(_forward_impl, inplace=True),
                           donate_argnums=(0,))


def image_wrapper_forward(img, mean, std, *, inplace=False):
    """img: [C, H, W] or [B, C, H, W]; mean/std: [C]."""
    mean = jnp.asarray(mean, jnp.float32)
    inv_std = 1.0 / jnp.asarray(std, jnp.float32)
    fn = _forward_inplace if inplace else _forward_copy
    return fn(img, mean, inv_std)


if __name__ == "__main__":
    key = jax.random.PRNGKey(0)
    B, C, H, W = 2, 4, 16, 16
    img = jax.random.normal(key, (B, C, H, W), dtype=jnp.float32)

    # Deterministic per-channel Normalize parameters.
    mean = jnp.array([0.1, -0.2, 0.3, 0.0], dtype=jnp.float32)
    std = jnp.array([0.5, 1.0, 2.0, 0.25], dtype=jnp.float32)

    # Batched (4-D) path, not inplace (wrapper clones).
    out = image_wrapper_forward(img, mean, std, inplace=False)
    out = jax.block_until_ready(out)
    ref = (img - mean[None, :, None, None]) / std[None, :, None, None]
    assert out.shape == img.shape and out.dtype == img.dtype
    assert jnp.allclose(out, ref, atol=1e-5, rtol=1e-5)

    # Single-image (3-D) path, inplace (buffer donated + aliased).
    img3 = jax.random.normal(jax.random.PRNGKey(1), (C, H, W), dtype=jnp.float32)
    ref3 = (img3 - mean[:, None, None]) / std[:, None, None]
    out3 = jax.block_until_ready(image_wrapper_forward(img3, mean, std, inplace=True))
    assert out3.shape == (C, H, W)
    assert jnp.allclose(out3, ref3, atol=1e-5, rtol=1e-5)

    print("KERNEL_OK")
</pallas_src>

<mosaic_0001>
module attributes {stable_mosaic.version = 11 : i64} {
  func.func @_normalize_kernel(%arg0: i32, %arg1: i32, %arg2: memref<8x1xf32, #tpu.memory_space<vmem>>, %arg3: memref<8x1xf32, #tpu.memory_space<vmem>>, %arg4: memref<8x128xf32, #tpu.memory_space<vmem>>, %arg5: memref<8x128xf32, #tpu.memory_space<vmem>>) attributes {dimension_semantics = [#tpu.dimension_semantics<parallel>, #tpu.dimension_semantics<parallel>], iteration_bounds = array<i64: 1, 2>, scalar_prefetch = 0 : i64, scratch_operands = 0 : i64, tpu.core_type = #tpu.core_type<tc>, window_params = [{transform_indices = @transform_0, window_bounds = array<i64: 8, 1>}, {transform_indices = @transform_1, window_bounds = array<i64: 8, 1>}, {transform_indices = @transform_2, window_bounds = array<i64: 8, 128>}, {transform_indices = @transform_3, window_bounds = array<i64: 8, 128>}]} {
    %c0 = arith.constant 0 : index
    %c0_0 = arith.constant 0 : index
    %0 = vector.load %arg4[%c0, %c0_0] : memref<8x128xf32, #tpu.memory_space<vmem>>, vector<8x128xf32>
    %c0_1 = arith.constant 0 : index
    %c0_2 = arith.constant 0 : index
    %1 = vector.load %arg2[%c0_1, %c0_2] : memref<8x1xf32, #tpu.memory_space<vmem>>, vector<8x1xf32>
    %2 = vector.broadcast %1 : vector<8x1xf32> to vector<8x128xf32>
    %3 = arith.subf %0, %2 : vector<8x128xf32>
    %c0_3 = arith.constant 0 : index
    %c0_4 = arith.constant 0 : index
    %4 = vector.load %arg3[%c0_3, %c0_4] : memref<8x1xf32, #tpu.memory_space<vmem>>, vector<8x1xf32>
    %5 = vector.broadcast %4 : vector<8x1xf32> to vector<8x128xf32>
    %6 = arith.mulf %3, %5 : vector<8x128xf32>
    %c0_5 = arith.constant 0 : index
    %c0_6 = arith.constant 0 : index
    %7 = vector.load %arg5[%c0_5, %c0_6] : memref<8x128xf32, #tpu.memory_space<vmem>>, vector<8x128xf32>
    tpu.vector_store %arg5[%c0_5, %c0_6], %6 {strides = array<i32>} : memref<8x128xf32, #tpu.memory_space<vmem>>, vector<8x128xf32>,
    return
  }
  func.func @transform_0(%arg0: i32, %arg1: i32) -> (i32, i32) {
    %c0_i32 = arith.constant 0 : i32
    %c0_i32_0 = arith.constant 0 : i32
    return %arg0, %c0_i32 : i32, i32
  }
  func.func @transform_1(%arg0: i32, %arg1: i32) -> (i32, i32) {
    %c0_i32 = arith.constant 0 : i32
    %c0_i32_0 = arith.constant 0 : i32
    return %arg0, %c0_i32 : i32, i32
  }
  func.func @transform_2(%arg0: i32, %arg1: i32) -> (i32, i32) {
    %c0_i32 = arith.constant 0 : i32
    return %arg0, %arg1 : i32, i32
  }
  func.func @transform_3(%arg0: i32, %arg1: i32) -> (i32, i32) {
    %c0_i32 = arith.constant 0 : i32
    return %arg0, %arg1 : i32, i32
  }
}

</mosaic_0001>

<bundles_post_ra>
// kernel: tile.1
= control target key start
LH: loop header
LB: loop body
LE: loop exit
PB: predicated region body
PF: predicated region fallthrough
CT: control target
= control target key end

     0   :  { %s34_s8 = smov 125   ;;  %s35_s9 = smov 126   ;;  %vm7_vm0 = vcmask 7168   ;;  %s61_s0 = inlined_call_operand.vmem [shape: f32[2,4], index: 0, kind: input, shape index: {}]   ;;  %s62_s1 = inlined_call_operand.vmem [shape: f32[8,1], index: 1, kind: output, shape index: {}]  }
   0x1   :  { %v4_v0 = vld [vmem:[%s61_s0] sm:$0x3]  ;;  %s33_s0 = smov 127  }
   0x2   :  { %5 = vst [vmem:[#allocation0] sm:$0x3] %v4_v0 }
   0x9   :  { %v9_v1 = vld [vmem:[#allocation0] sm:$0x3]  }
   0xa   :  { %v21_v2 = vld [vmem:[#allocation0] sm:$0x3]   ;;  %10 = vrot.lane.b32.xlu0 %v9_v1, %s33_s0 }
   0xb   :  { %22 = vrot.lane.b32.xlu1 %v21_v2, %s34_s8  ;;  %v15_v3 = vld [vmem:[#allocation0] sm:$0x3]  }
   0xc   :  { %v6_v4 = vld [vmem:[#allocation0] sm:$0x3]  }
   0xd   :  { %8 = vst.msk [vmem:[%s62_s1] ss:$4 sm:$0x3] %vm7_vm0, %v6_v4  }
  0x12   :  { %16 = vrot.lane.b32.xlu0 %v15_v3, %s35_s9 }
  0x7c   :  { %v11_v5 = vpop.permute.xlu0 %10  }
  0x7d   :  { %v23_v6 = vpop.permute.xlu1 %22   ;;  %27 = vst.msk [vmem:[%s62_s1 + $0x1] ss:$4 sm:$0x3] %vm7_vm0, %v11_v5  }
  0x7e   :  { %29 = vst.msk [vmem:[%s62_s1 + $0x3] ss:$4 sm:$0x3] %vm7_vm0, %v23_v6  }
  0x84   :  { %v17_v7 = vpop.permute.xlu0 %16  }
  0x85   :  { %28 = vst.msk [vmem:[%s62_s1 + $0x2] ss:$4 sm:$0x3] %vm7_vm0, %v17_v7  }

// kernel: tile.18
= control target key start
LH: loop header
LB: loop body
LE: loop exit
PB: predicated region body
PF: predicated region fallthrough
CT: control target
= control target key end

     0   :  { %s22_s0 = inlined_call_operand.vmem [shape: f32[4], index: 0, kind: input, shape index: {}]   ;;  %s23_s1 = inlined_call_operand.vmem [shape: f32[2,4], index: 1, kind: output, shape index: {}]  }
   0x1   :  { %v4_v0 = vld [vmem:[%s22_s0] ss:$0 sm:$0xff] }
   0x2   :  { %5 = vst [vmem:[%s23_s1] sm:$0x3] %v4_v0 }

// kernel: tile.13
= control target key start
LH: loop header
LB: loop body
LE: loop exit
PB: predicated region body
PF: predicated region fallthrough
CT: control target
= control target key end

     0   :  { %2 = vsyncpa [#allocation1], 0  ;;  %s48_s8 = smov [#allocation0]   ;;  %s65_s0 = inlined_call_operand.hbm [shape: f32[4], index: 0, kind: input, shape index: {}]   ;;  %s66_s1 = inlined_call_operand.vmem [shape: f32[2,4], index: 1, kind: output, shape index: {}]  }
   0x1   :  { %s8_s0 = sshll.u32 %s65_s0, 4  ;;  %s10_s9 = sshll.u32 %s48_s8, 4  ;;  %s9_s0 = int_to_ptr.hbm [resolvable:$true] %s8_s0  ;;  %s11_s9 = int_to_ptr.vmem [resolvable:$true] %s10_s9 }
   0x2   :  { %13 = dma.hbm_to_vmem [thread:$0]  %s9_s0, 16, %s11_s9, [#allocation1]  }
   0x3   :  { %46 = dma.done.wait [#allocation1], 16  }
   0x4   :  { %47 = vsyncadd [#allocation1], 4294967280  ;;  %v18_v0 = vld [vmem:[#allocation0] ss:$0 sm:$0xff] }
   0x5   :  { %19 = vst [vmem:[%s66_s1] sm:$0x3] %v18_v0 }
   0x6   :  { %20 = vsyncpa [#allocation1], 1 }

// kernel: _forward_impl.1
= control target key start
LH: loop header
LB: loop body
LE: loop exit
PB: predicated region body
PF: predicated region fallthrough
CT: control target
= control target key end

     0   :  { %s448_s12 = smov 0   ;;  %s450_s13 = smov 0   ;;  %s480_s0 = inlined_call_operand.vmem [shape: f32[8,1], index: 0, kind: input, shape index: {}]   ;;  %s481_s1 = inlined_call_operand.vmem [shape: f32[8,1], index: 1, kind: input, shape index: {}]   ;;  %s482_s2 = inlined_call_operand.vmem [shape: f32[8,256], index: 2, kind: input, shape index: {}]   ;;  %s483_s3 = inlined_call_operand.vmem [shape: f32[8,256], index: 3, kind: output, shape index: {}]  }
   0x1   :  { %s452_s14 = smov 0  }
   0x2 LB: > { %s22_s15 = sadd.s32 1, %s421_s13  ;;  %p372_p0 = scmp.ge.s32.totalorder %s425_s14, 1  ;;  %s425_s14 = sphi %s452_s14, %s13_s14   ;;  %s421_s13 = sphi %s450_s13, %s485_s13   ;;  %s417_s12 = sphi %s448_s12, %s484_s12  }
   0x3   : > { %p23_p1 = scmp.ge.s32.totalorder %s22_s15, 2  ;;  %p174_p2 = scmp.lt.s32.totalorder %s425_s14, 3 }
   0x5   : > { %s487_s15 = smov (%p23_p1, %s22_s15), 0  ;;  %p175_p3 = pnand %p372_p0, %p174_p2 }
   0x6   : > { %p222_p4 = scmp.lt.s32.totalorder (!%p175_p3), %s417_s12, 1 }
   0x7   : > { %178 = sbr.rel (%p175_p3) target bundleno = 140 (0x8c), region = 32 }
   0xc   : > { %v237_v0 = vld [vmem:[%s480_s0] sm:$0xff]  ;;  %v427_v1 = vmov 0   ;;  %s489_s12 = smov (!%p222_p4, %s417_s12), 1 }
   0xd   : > { %402 = vset.pattern.permute.xlu0 %v427_v1  ;;  %v244_v2 = vld [vmem:[%s481_s1] sm:$0xff]  ;;  %s373_s20 = sshll.u32 %s489_s12, 3 }
   0xe   : > { %240 = vperm.xlu0 %402, %v237_v0   ;;  %s227_s23 = scalar_lea.vmem %s482_s2, %s373_s20  ;;  %s235_s26 = scalar_lea.vmem %s483_s3, %s373_s20 }
   0xf   : > { %v236_v4 = vld [vmem:[%s227_s23] sm:$0xff] }
  0x16   : > { %247 = vperm.xlu0 %402, %v244_v2  }
  0x80   : > { %v241_v3 = vpop.permute.xlu0 %240 }
  0x81   : > { %v243_v5 = vsub.f32 %v236_v4, %v241_v3 }
  0x88   : > { %v248_v6 = vpop.permute.xlu0 %247 }
  0x89   : > { %v250_v7 = vmul.f32 %v248_v6, %v243_v5 }
  0x8b   : > { %251 = vst [vmem:[%s235_s26] sm:$0xff] %v250_v7 }
  0x8c PF: > { %s13_s14 = sadd.s32 1, %s425_s14   ;;  %s484_s12 = smov %s421_s13 }
  0x8d   : > { %p10_p5 = scmp.ge.s32.totalorder %s13_s14, 4   ;;  %s485_s13 = smov %s487_s15 }
  0x8f   :  { %12 = sbr.rel (!%p10_p5) target bundleno = 2 (0x2), region = 68 }

</bundles_post_ra>
